<compile_context>
chip_gen: v7x
topology: tpu7x:2x2x1
jax: 0.10.0
libtpu: 0.0.40
codegen_flags: <defaults>
</compile_context>

<pallas_src>
import jax
import jax.numpy as jnp
from jax import lax
from jax.experimental import pallas as pl
from jax.experimental.pallas import tpu as pltpu

# ---------------- configuration (small, consistent with the module) ----------------
N, H, W = 2, 16, 16          # batch, spatial
C_IN, C_OUT = 4, 8           # FilterIn, FilterNum
KS = 3                       # PAR['FilterSize']
PAD = (KS - 1) // 2          # FindPad(3) == 1
EPS = 1e-5
RES_CONN = True              # PAR['ResidualConnections']
LANES = W * C_OUT            # 128 -> lane-dense working width (exactly one lane tile)
ROWS = N * H                 # 32 -> sublane-dense working height
KFUSED = KS * LANES          # 384 -> fused K (all 3 kernel rows)
M_TOTAL = N * H * W          # elements per channel for the batch statistics
MXU_DTYPE = jnp.bfloat16     # MXU operand dtype (accumulation stays f32)


# ---------------- Pallas kernel ----------------
def block_kernel(x_ref, w_ref, aff_ref, out_ref):
    """Lane-dense NoSkipConvBlock, single program.

    x_ref   : (N*H, W*C_OUT) f32   input slab (channels zero-padded to C_OUT)
    w_ref   : (3, 3*W*C_OUT, W*C_OUT) bf16  per-stage banded weights, dy fused along K
    aff_ref : (3, 3, W*C_OUT) f32  per-stage [conv bias; gamma; beta], lane-broadcast
    out_ref : (N*H, W*C_OUT) f32   lane-dense output slab
    """
    # Image-row masks for the vertical (dy) halo — computed once, reused by all stages.
    row = lax.broadcasted_iota(jnp.int32, (ROWS, LANES), 0)
    has_above = (row % H) != 0         # row h-1 exists inside the same image
    has_below = (row % H) != (H - 1)   # row h+1 exists inside the same image
    inv_m = 1.0 / M_TOTAL

    def build_lhs(y):
        # dy row-halo as sublane shifts of the dense slab; the wrapped / cross-batch
        # rows are zeroed by the boundary masks (so padding rows never materialize).
        up = jnp.where(has_above, jnp.roll(y, 1, axis=0), 0.0)    # holds row h-1
        dn = jnp.where(has_below, jnp.roll(y, -1, axis=0), 0.0)   # holds row h+1
        return jnp.concatenate([up, y, dn], axis=1).astype(MXU_DTYPE)  # (32, 384)

    def stage(y, s):
        # One fused MXU matmul per stage: (32, 384) @ (384, 128) -> (32, 128) f32.
        conv = jnp.dot(build_lhs(y), w_ref[s], preferred_element_type=jnp.float32)
        aff = aff_ref[s]                                           # (3, 128)
        act = jnp.maximum(conv + aff[0:1, :], 0.0)                 # conv bias + ReLU

        # BatchNorm2d training forward, single pass (sum & sum-of-squares).
        # Channel c lives at lanes {w*C_OUT + c}; log-step lane rolls reduce over w and
        # broadcast the per-channel totals back to every lane (XLU slot, not VPU).
        stats = jnp.concatenate([jnp.sum(act, axis=0, keepdims=True),
                                 jnp.sum(act * act, axis=0, keepdims=True)],
                                axis=0)                            # (2, 128)
        sh = C_OUT
        while sh < LANES:
            stats = stats + pltpu.roll(stats, shift=sh, axis=1)
            sh *= 2
        mean = stats[0:1, :] * inv_m
        var = stats[1:2, :] * inv_m - mean * mean                  # biased variance
        scale = aff[1:2, :] * lax.rsqrt(var + EPS)                 # rsqrt -> EUP
        shift = aff[2:3, :] - mean * scale
        return act * scale + shift                                 # folded BN affine

    first = stage(x_ref[...], 0)
    second = stage(first, 1)
    third = stage(second, 2)
    out_ref[...] = (third + first) if RES_CONN else third


# ---------------- wrapper-side layout plumbing ----------------
def _banded(w_dy):
    """(KS, C_OUT, C_OUT) kernel-row weights (kx, cin_padded, cout) ->
    (W*C_OUT, W*C_OUT) banded matmul RHS:
      rhs[w_in*C + ci, w_out*C + co] = w_dy[w_in - w_out + PAD, ci, co] if in-band else 0
    so (dense_row_lanes @ rhs) performs all W shifted dot products at once; the zero
    out-of-band taps also implement the W-direction zero padding (no W halo needed)."""
    win = jnp.arange(W)[:, None]
    wout = jnp.arange(W)[None, :]
    dx = win - wout + PAD                                 # (W, W)
    valid = (dx >= 0) & (dx < KS)
    gathered = w_dy[jnp.clip(dx, 0, KS - 1)]              # (W, W, C, C)
    banded = jnp.where(valid[:, :, None, None], gathered, 0.0)
    return banded.transpose(0, 2, 1, 3).reshape(W * C_OUT, W * C_OUT)


def _lane_vec(v):
    """(C_OUT,) per-channel vector -> (W*C_OUT,) lane-broadcast vector."""
    return jnp.tile(v.astype(jnp.float32), W)


def no_skip_conv_block(x_nchw, params):
    """params = [(w, conv_bias, gamma, beta)] * 3 with
       w: (KS, KS, Cin, C_OUT) (HWIO), conv_bias/gamma/beta: (C_OUT,).
       x_nchw: (N, C_IN, H, W). Returns NCHW."""
    # The in-kernel lane-roll reduction requires one full 128-lane tile per row and
    # C_OUT to divide it exactly.
    assert W * C_OUT == 128 and 128 % C_OUT == 0 and C_IN <= C_OUT

    # Input: NCHW -> NHWC, zero-pad channels to C_OUT, fuse (W, C) into lanes.
    x = jnp.transpose(x_nchw, (0, 2, 3, 1)).astype(jnp.float32)
    x = jnp.pad(x, ((0, 0), (0, 0), (0, 0), (0, C_OUT - C_IN)))
    x_slab = x.reshape(ROWS, LANES)                                # (32, 128)

    # Pack weights (dy fused along K) and affine params per stage.
    w_stages, aff_stages = [], []
    for (w, cb, gamma, beta) in params:
        w_p = jnp.pad(w.astype(jnp.float32),
                      ((0, 0), (0, 0), (0, C_OUT - w.shape[2]), (0, 0)))  # cin -> C_OUT
        w_stages.append(jnp.concatenate([_banded(w_p[dy]) for dy in range(KS)], axis=0))
        aff_stages.append(jnp.stack([_lane_vec(cb), _lane_vec(gamma), _lane_vec(beta)]))
    w_all = jnp.stack(w_stages).astype(MXU_DTYPE)                  # (3, 384, 128) bf16
    aff_all = jnp.stack(aff_stages).astype(jnp.float32)            # (3, 3, 128) f32

    vmem = pl.BlockSpec(memory_space=pltpu.MemorySpace.VMEM)
    out = pl.pallas_call(
        block_kernel,
        out_shape=jax.ShapeDtypeStruct((ROWS, LANES), jnp.float32),   # (32, 128)
        in_specs=[vmem, vmem, vmem],
        out_specs=vmem,
    )(x_slab, w_all, aff_all)

    # lane-dense slab -> NHWC -> NCHW (pure layout plumbing, handled by XLA)
    return jnp.transpose(out.reshape(N, H, W, C_OUT), (0, 3, 1, 2))


# ---------------- pure-JAX references (for the correctness checks) ----------------
def _ref_stage(x, w, cb, gamma, beta, quantize):
    if quantize:   # mirror the kernel's bf16 MXU operands (f32 accumulation)
        x_c = x.astype(jnp.bfloat16).astype(jnp.float32)
        w_c = w.astype(jnp.bfloat16).astype(jnp.float32)
    else:
        x_c, w_c = x, w
    y = lax.conv_general_dilated(x_c, w_c, window_strides=(1, 1), padding="SAME",
                                 dimension_numbers=("NHWC", "HWIO", "NHWC"),
                                 precision=lax.Precision.HIGHEST)
    y = jnp.maximum(y + cb.reshape(1, 1, 1, -1), 0.0)
    mean = jnp.mean(y, axis=(0, 1, 2), keepdims=True)
    var = jnp.mean(jnp.square(y - mean), axis=(0, 1, 2), keepdims=True)
    return ((y - mean) * lax.rsqrt(var + EPS) * gamma.reshape(1, 1, 1, -1)
            + beta.reshape(1, 1, 1, -1))


def _ref_block(x_nchw, params, quantize=False):
    x = jnp.transpose(x_nchw, (0, 2, 3, 1)).astype(jnp.float32)
    first = _ref_stage(x, *params[0], quantize=quantize)
    second = _ref_stage(first, *params[1], quantize=quantize)
    third = _ref_stage(second, *params[2], quantize=quantize)
    out = (third + first) if RES_CONN else third
    return jnp.transpose(out, (0, 3, 1, 2))


# ---------------- deterministic parameter construction ----------------
def make_params(key):
    params = []
    cin = C_IN
    for _ in range(3):
        key, kw, kb, kg, kbt = jax.random.split(key, 5)
        w = jax.random.normal(kw, (KS, KS, cin, C_OUT), jnp.float32) * 0.1
        cb = jax.random.normal(kb, (C_OUT,), jnp.float32) * 0.1
        gamma = 1.0 + 0.1 * jax.random.normal(kg, (C_OUT,), jnp.float32)
        beta = 0.1 * jax.random.normal(kbt, (C_OUT,), jnp.float32)
        params.append((w, cb, gamma, beta))
        cin = C_OUT
    return params


if __name__ == "__main__":
    key = jax.random.PRNGKey(0)
    kx, kp = jax.random.split(key)
    x = jax.random.normal(kx, (N, C_IN, H, W), jnp.float32)   # PyTorch NCHW input
    params = make_params(kp)

    out = jax.block_until_ready(no_skip_conv_block(x, params))
    assert out.shape == (N, C_OUT, H, W)

    # Tight check: reference performing the same math (bf16 conv operands, f32 acc).
    ref_q = jax.block_until_ready(_ref_block(x, params, quantize=True))
    assert jnp.allclose(out, ref_q, atol=1e-3, rtol=1e-3), "mismatch vs bf16-operand reference"

    # Sanity check vs the full-f32 reference; looser tolerance accounts for the
    # deliberate bf16 MXU operands (per perf review) vs f32 convolution.
    ref_f = jax.block_until_ready(_ref_block(x, params, quantize=False))
    assert jnp.allclose(out, ref_f, atol=5e-2, rtol=5e-2), "mismatch vs f32 reference"

    print("KERNEL_OK")
</pallas_src>

<mosaic_0001>
module attributes {stable_mosaic.version = 11 : i64} {
  func.func @block_kernel(%arg0: memref<32x128xf32, #tpu.memory_space<vmem>>, %arg1: memref<3x384x128xbf16, #tpu.memory_space<vmem>>, %arg2: memref<3x3x128xf32, #tpu.memory_space<vmem>>, %arg3: memref<32x128xf32, #tpu.memory_space<vmem>>) attributes {dimension_semantics = [], scalar_prefetch = 0 : i64, scratch_operands = 0 : i64, tpu.core_type = #tpu.core_type<tc>} {
    %0 = tpu.iota {dimensions = array<i32: 0>} : vector<32x128xi32>
    %c16_i32 = arith.constant 16 : i32
    %c0_i32 = arith.constant 0 : i32
    %1 = arith.cmpi eq, %c16_i32, %c0_i32 : i32
    %c1_i32 = arith.constant 1 : i32
    %2 = arith.select %1, %c1_i32, %c16_i32 : i32
    %3 = vector.broadcast %2 : i32 to vector<32x128xi32>
    %4 = arith.remsi %0, %3 : vector<32x128xi32>
    %c0_i32_0 = arith.constant 0 : i32
    %5 = vector.broadcast %c0_i32_0 : i32 to vector<32x128xi32>
    %6 = arith.cmpi ne, %4, %5 : vector<32x128xi32>
    %c0_i32_1 = arith.constant 0 : i32
    %7 = vector.broadcast %c0_i32_1 : i32 to vector<32x128xi32>
    %8 = arith.cmpi slt, %4, %7 : vector<32x128xi32>
    %c0_i32_2 = arith.constant 0 : i32
    %9 = arith.cmpi slt, %2, %c0_i32_2 : i32
    %10 = vector.broadcast %9 : i1 to vector<32x128xi1>
    %11 = vector.broadcast %10 : vector<32x128xi1> to vector<32x128xi1>
    %12 = arith.xori %8, %11 : vector<32x128xi1>
    %13 = arith.andi %12, %6 : vector<32x128xi1>
    %14 = vector.broadcast %2 : i32 to vector<32x128xi32>
    %15 = arith.addi %4, %14 : vector<32x128xi32>
    %16 = arith.select %13, %15, %4 : vector<32x128xi1>, vector<32x128xi32>
    %c0_i32_3 = arith.constant 0 : i32
    %17 = vector.broadcast %c0_i32_3 : i32 to vector<32x128xi32>
    %18 = arith.cmpi ne, %16, %17 : vector<32x128xi32>
    %c16_i32_4 = arith.constant 16 : i32
    %c0_i32_5 = arith.constant 0 : i32
    %19 = arith.cmpi eq, %c16_i32_4, %c0_i32_5 : i32
    %c1_i32_6 = arith.constant 1 : i32
    %20 = arith.select %19, %c1_i32_6, %c16_i32_4 : i32
    %21 = vector.broadcast %20 : i32 to vector<32x128xi32>
    %22 = arith.remsi %0, %21 : vector<32x128xi32>
    %c0_i32_7 = arith.constant 0 : i32
    %23 = vector.broadcast %c0_i32_7 : i32 to vector<32x128xi32>
    %24 = arith.cmpi ne, %22, %23 : vector<32x128xi32>
    %c0_i32_8 = arith.constant 0 : i32
    %25 = vector.broadcast %c0_i32_8 : i32 to vector<32x128xi32>
    %26 = arith.cmpi slt, %22, %25 : vector<32x128xi32>
    %c0_i32_9 = arith.constant 0 : i32
    %27 = arith.cmpi slt, %20, %c0_i32_9 : i32
    %28 = vector.broadcast %27 : i1 to vector<32x128xi1>
    %29 = vector.broadcast %28 : vector<32x128xi1> to vector<32x128xi1>
    %30 = arith.xori %26, %29 : vector<32x128xi1>
    %31 = arith.andi %30, %24 : vector<32x128xi1>
    %32 = vector.broadcast %20 : i32 to vector<32x128xi32>
    %33 = arith.addi %22, %32 : vector<32x128xi32>
    %34 = arith.select %31, %33, %22 : vector<32x128xi1>, vector<32x128xi32>
    %c15_i32 = arith.constant 15 : i32
    %35 = vector.broadcast %c15_i32 : i32 to vector<32x128xi32>
    %36 = arith.cmpi ne, %34, %35 : vector<32x128xi32>
    %c0 = arith.constant 0 : index
    %c0_10 = arith.constant 0 : index
    %37 = vector.load %arg0[%c0, %c0_10] : memref<32x128xf32, #tpu.memory_space<vmem>>, vector<32x128xf32>
    %38 = vector.extract_strided_slice %37 {offsets = [31, 0], sizes = [1, 128], strides = [1, 1]} : vector<32x128xf32> to vector<1x128xf32>
    %39 = vector.extract_strided_slice %37 {offsets = [0, 0], sizes = [31, 128], strides = [1, 1]} : vector<32x128xf32> to vector<31x128xf32>
    %40 = tpu.concatenate %38, %39 in 0 : vector<1x128xf32>, vector<31x128xf32> -> vector<32x128xf32>
    %cst = arith.constant 0.000000e+00 : f32
    %41 = vector.broadcast %cst : f32 to vector<32x128xf32>
    %42 = arith.select %18, %40, %41 : vector<32x128xi1>, vector<32x128xf32>
    %43 = vector.extract_strided_slice %37 {offsets = [1, 0], sizes = [31, 128], strides = [1, 1]} : vector<32x128xf32> to vector<31x128xf32>
    %44 = vector.extract_strided_slice %37 {offsets = [0, 0], sizes = [1, 128], strides = [1, 1]} : vector<32x128xf32> to vector<1x128xf32>
    %45 = tpu.concatenate %43, %44 in 0 : vector<31x128xf32>, vector<1x128xf32> -> vector<32x128xf32>
    %cst_11 = arith.constant 0.000000e+00 : f32
    %46 = vector.broadcast %cst_11 : f32 to vector<32x128xf32>
    %47 = arith.select %36, %45, %46 : vector<32x128xi1>, vector<32x128xf32>
    %48 = tpu.concatenate %42, %37, %47 in 1 : vector<32x128xf32>, vector<32x128xf32>, vector<32x128xf32> -> vector<32x384xf32>
    %49 = arith.truncf %48 : vector<32x384xf32> to vector<32x384xbf16>
    %c0_12 = arith.constant 0 : index
    %c0_13 = arith.constant 0 : index
    %c0_14 = arith.constant 0 : index
    %50 = vector.load %arg1[%c0_12, %c0_13, %c0_14] : memref<3x384x128xbf16, #tpu.memory_space<vmem>>, vector<1x384x128xbf16>
    %51 = vector.shape_cast %50 : vector<1x384x128xbf16> to vector<384x128xbf16>
    %cst_15 = arith.constant dense<0.000000e+00> : vector<32x128xf32>
    %52 = tpu.matmul %49, %51, %cst_15 {dimension_numbers = #tpu.dot_dimension_numbers<[1], [0], [0], [1], [0, 0, 1, 1], [], []>} : vector<32x384xbf16>, vector<384x128xbf16>, vector<32x128xf32> -> vector<32x128xf32>
    %c0_16 = arith.constant 0 : index
    %c0_17 = arith.constant 0 : index
    %c0_18 = arith.constant 0 : index
    %53 = vector.load %arg2[%c0_16, %c0_17, %c0_18] : memref<3x3x128xf32, #tpu.memory_space<vmem>>, vector<1x3x128xf32>
    %54 = vector.shape_cast %53 : vector<1x3x128xf32> to vector<3x128xf32>
    %55 = vector.extract_strided_slice %54 {offsets = [0, 0], sizes = [1, 128], strides = [1, 1]} : vector<3x128xf32> to vector<1x128xf32>
    %56 = vector.broadcast %55 : vector<1x128xf32> to vector<32x128xf32>
    %57 = arith.addf %52, %56 : vector<32x128xf32>
    %cst_19 = arith.constant 0.000000e+00 : f32
    %58 = vector.broadcast %cst_19 : f32 to vector<32x128xf32>
    %59 = arith.maximumf %57, %58 : vector<32x128xf32>
    %cst_20 = arith.constant dense<0.000000e+00> : vector<128xf32>
    %60 = vector.multi_reduction <add>, %59, %cst_20 [0] : vector<32x128xf32> to vector<128xf32>
    %61 = vector.shape_cast %60 : vector<128xf32> to vector<1x128xf32>
    %62 = arith.mulf %59, %59 : vector<32x128xf32>
    %cst_21 = arith.constant dense<0.000000e+00> : vector<128xf32>
    %63 = vector.multi_reduction <add>, %62, %cst_21 [0] : vector<32x128xf32> to vector<128xf32>
    %64 = vector.shape_cast %63 : vector<128xf32> to vector<1x128xf32>
    %65 = tpu.concatenate %61, %64 in 0 : vector<1x128xf32>, vector<1x128xf32> -> vector<2x128xf32>
    %c8_i32 = arith.constant 8 : i32
    %66 = tpu.dynamic_rotate %65 by %c8_i32 dim 1 : vector<2x128xf32>, i32 -> vector<2x128xf32>
    %67 = arith.addf %65, %66 : vector<2x128xf32>
    %c16_i32_22 = arith.constant 16 : i32
    %68 = tpu.dynamic_rotate %67 by %c16_i32_22 dim 1 : vector<2x128xf32>, i32 -> vector<2x128xf32>
    %69 = arith.addf %67, %68 : vector<2x128xf32>
    %c32_i32 = arith.constant 32 : i32
    %70 = tpu.dynamic_rotate %69 by %c32_i32 dim 1 : vector<2x128xf32>, i32 -> vector<2x128xf32>
    %71 = arith.addf %69, %70 : vector<2x128xf32>
    %c64_i32 = arith.constant 64 : i32
    %72 = tpu.dynamic_rotate %71 by %c64_i32 dim 1 : vector<2x128xf32>, i32 -> vector<2x128xf32>
    %73 = arith.addf %71, %72 : vector<2x128xf32>
    %74 = vector.extract_strided_slice %73 {offsets = [0, 0], sizes = [1, 128], strides = [1, 1]} : vector<2x128xf32> to vector<1x128xf32>
    %cst_23 = arith.constant 0.001953125 : f32
    %75 = vector.broadcast %cst_23 : f32 to vector<1x128xf32>
    %76 = arith.mulf %74, %75 : vector<1x128xf32>
    %77 = vector.extract_strided_slice %73 {offsets = [1, 0], sizes = [1, 128], strides = [1, 1]} : vector<2x128xf32> to vector<1x128xf32>
    %cst_24 = arith.constant 0.001953125 : f32
    %78 = vector.broadcast %cst_24 : f32 to vector<1x128xf32>
    %79 = arith.mulf %77, %78 : vector<1x128xf32>
    %80 = arith.mulf %76, %76 : vector<1x128xf32>
    %81 = arith.subf %79, %80 : vector<1x128xf32>
    %82 = vector.extract_strided_slice %54 {offsets = [1, 0], sizes = [1, 128], strides = [1, 1]} : vector<3x128xf32> to vector<1x128xf32>
    %cst_25 = arith.constant 9.99999974E-6 : f32
    %83 = vector.broadcast %cst_25 : f32 to vector<1x128xf32>
    %84 = arith.addf %81, %83 : vector<1x128xf32>
    %85 = math.rsqrt %84 : vector<1x128xf32>
    %86 = arith.mulf %82, %85 : vector<1x128xf32>
    %87 = vector.extract_strided_slice %54 {offsets = [2, 0], sizes = [1, 128], strides = [1, 1]} : vector<3x128xf32> to vector<1x128xf32>
    %88 = arith.mulf %76, %86 : vector<1x128xf32>
    %89 = arith.subf %87, %88 : vector<1x128xf32>
    %90 = vector.broadcast %86 : vector<1x128xf32> to vector<32x128xf32>
    %91 = arith.mulf %59, %90 : vector<32x128xf32>
    %92 = vector.broadcast %89 : vector<1x128xf32> to vector<32x128xf32>
    %93 = arith.addf %91, %92 : vector<32x128xf32>
    %94 = vector.extract_strided_slice %93 {offsets = [31, 0], sizes = [1, 128], strides = [1, 1]} : vector<32x128xf32> to vector<1x128xf32>
    %95 = vector.extract_strided_slice %93 {offsets = [0, 0], sizes = [31, 128], strides = [1, 1]} : vector<32x128xf32> to vector<31x128xf32>
    %96 = tpu.concatenate %94, %95 in 0 : vector<1x128xf32>, vector<31x128xf32> -> vector<32x128xf32>
    %cst_26 = arith.constant 0.000000e+00 : f32
    %97 = vector.broadcast %cst_26 : f32 to vector<32x128xf32>
    %98 = arith.select %18, %96, %97 : vector<32x128xi1>, vector<32x128xf32>
    %99 = vector.extract_strided_slice %93 {offsets = [1, 0], sizes = [31, 128], strides = [1, 1]} : vector<32x128xf32> to vector<31x128xf32>
    %100 = vector.extract_strided_slice %93 {offsets = [0, 0], sizes = [1, 128], strides = [1, 1]} : vector<32x128xf32> to vector<1x128xf32>
    %101 = tpu.concatenate %99, %100 in 0 : vector<31x128xf32>, vector<1x128xf32> -> vector<32x128xf32>
    %cst_27 = arith.constant 0.000000e+00 : f32
    %102 = vector.broadcast %cst_27 : f32 to vector<32x128xf32>
    %103 = arith.select %36, %101, %102 : vector<32x128xi1>, vector<32x128xf32>
    %104 = tpu.concatenate %98, %93, %103 in 1 : vector<32x128xf32>, vector<32x128xf32>, vector<32x128xf32> -> vector<32x384xf32>
    %105 = arith.truncf %104 : vector<32x384xf32> to vector<32x384xbf16>
    %c1 = arith.constant 1 : index
    %c0_28 = arith.constant 0 : index
    %c0_29 = arith.constant 0 : index
    %106 = vector.load %arg1[%c1, %c0_28, %c0_29] : memref<3x384x128xbf16, #tpu.memory_space<vmem>>, vector<1x384x128xbf16>
    %107 = vector.shape_cast %106 : vector<1x384x128xbf16> to vector<384x128xbf16>
    %cst_30 = arith.constant dense<0.000000e+00> : vector<32x128xf32>
    %108 = tpu.matmul %105, %107, %cst_30 {dimension_numbers = #tpu.dot_dimension_numbers<[1], [0], [0], [1], [0, 0, 1, 1], [], []>} : vector<32x384xbf16>, vector<384x128xbf16>, vector<32x128xf32> -> vector<32x128xf32>
    %c1_31 = arith.constant 1 : index
    %c0_32 = arith.constant 0 : index
    %c0_33 = arith.constant 0 : index
    %109 = vector.load %arg2[%c1_31, %c0_32, %c0_33] : memref<3x3x128xf32, #tpu.memory_space<vmem>>, vector<1x3x128xf32>
    %110 = vector.shape_cast %109 : vector<1x3x128xf32> to vector<3x128xf32>
    %111 = vector.extract_strided_slice %110 {offsets = [0, 0], sizes = [1, 128], strides = [1, 1]} : vector<3x128xf32> to vector<1x128xf32>
    %112 = vector.broadcast %111 : vector<1x128xf32> to vector<32x128xf32>
    %113 = arith.addf %108, %112 : vector<32x128xf32>
    %cst_34 = arith.constant 0.000000e+00 : f32
    %114 = vector.broadcast %cst_34 : f32 to vector<32x128xf32>
    %115 = arith.maximumf %113, %114 : vector<32x128xf32>
    %cst_35 = arith.constant dense<0.000000e+00> : vector<128xf32>
    %116 = vector.multi_reduction <add>, %115, %cst_35 [0] : vector<32x128xf32> to vector<128xf32>
    %117 = vector.shape_cast %116 : vector<128xf32> to vector<1x128xf32>
    %118 = arith.mulf %115, %115 : vector<32x128xf32>
    %cst_36 = arith.constant dense<0.000000e+00> : vector<128xf32>
    %119 = vector.multi_reduction <add>, %118, %cst_36 [0] : vector<32x128xf32> to vector<128xf32>
    %120 = vector.shape_cast %119 : vector<128xf32> to vector<1x128xf32>
    %121 = tpu.concatenate %117, %120 in 0 : vector<1x128xf32>, vector<1x128xf32> -> vector<2x128xf32>
    %c8_i32_37 = arith.constant 8 : i32
    %122 = tpu.dynamic_rotate %121 by %c8_i32_37 dim 1 : vector<2x128xf32>, i32 -> vector<2x128xf32>
    %123 = arith.addf %121, %122 : vector<2x128xf32>
    %c16_i32_38 = arith.constant 16 : i32
    %124 = tpu.dynamic_rotate %123 by %c16_i32_38 dim 1 : vector<2x128xf32>, i32 -> vector<2x128xf32>
    %125 = arith.addf %123, %124 : vector<2x128xf32>
    %c32_i32_39 = arith.constant 32 : i32
    %126 = tpu.dynamic_rotate %125 by %c32_i32_39 dim 1 : vector<2x128xf32>, i32 -> vector<2x128xf32>
    %127 = arith.addf %125, %126 : vector<2x128xf32>
    %c64_i32_40 = arith.constant 64 : i32
    %128 = tpu.dynamic_rotate %127 by %c64_i32_40 dim 1 : vector<2x128xf32>, i32 -> vector<2x128xf32>
    %129 = arith.addf %127, %128 : vector<2x128xf32>
    %130 = vector.extract_strided_slice %129 {offsets = [0, 0], sizes = [1, 128], strides = [1, 1]} : vector<2x128xf32> to vector<1x128xf32>
    %cst_41 = arith.constant 0.001953125 : f32
    %131 = vector.broadcast %cst_41 : f32 to vector<1x128xf32>
    %132 = arith.mulf %130, %131 : vector<1x128xf32>
    %133 = vector.extract_strided_slice %129 {offsets = [1, 0], sizes = [1, 128], strides = [1, 1]} : vector<2x128xf32> to vector<1x128xf32>
    %cst_42 = arith.constant 0.001953125 : f32
    %134 = vector.broadcast %cst_42 : f32 to vector<1x128xf32>
    %135 = arith.mulf %133, %134 : vector<1x128xf32>
    %136 = arith.mulf %132, %132 : vector<1x128xf32>
    %137 = arith.subf %135, %136 : vector<1x128xf32>
    %138 = vector.extract_strided_slice %110 {offsets = [1, 0], sizes = [1, 128], strides = [1, 1]} : vector<3x128xf32> to vector<1x128xf32>
    %cst_43 = arith.constant 9.99999974E-6 : f32
    %139 = vector.broadcast %cst_43 : f32 to vector<1x128xf32>
    %140 = arith.addf %137, %139 : vector<1x128xf32>
    %141 = math.rsqrt %140 : vector<1x128xf32>
    %142 = arith.mulf %138, %141 : vector<1x128xf32>
    %143 = vector.extract_strided_slice %110 {offsets = [2, 0], sizes = [1, 128], strides = [1, 1]} : vector<3x128xf32> to vector<1x128xf32>
    %144 = arith.mulf %132, %142 : vector<1x128xf32>
    %145 = arith.subf %143, %144 : vector<1x128xf32>
    %146 = vector.broadcast %142 : vector<1x128xf32> to vector<32x128xf32>
    %147 = arith.mulf %115, %146 : vector<32x128xf32>
    %148 = vector.broadcast %145 : vector<1x128xf32> to vector<32x128xf32>
    %149 = arith.addf %147, %148 : vector<32x128xf32>
    %150 = vector.extract_strided_slice %149 {offsets = [31, 0], sizes = [1, 128], strides = [1, 1]} : vector<32x128xf32> to vector<1x128xf32>
    %151 = vector.extract_strided_slice %149 {offsets = [0, 0], sizes = [31, 128], strides = [1, 1]} : vector<32x128xf32> to vector<31x128xf32>
    %152 = tpu.concatenate %150, %151 in 0 : vector<1x128xf32>, vector<31x128xf32> -> vector<32x128xf32>
    %cst_44 = arith.constant 0.000000e+00 : f32
    %153 = vector.broadcast %cst_44 : f32 to vector<32x128xf32>
    %154 = arith.select %18, %152, %153 : vector<32x128xi1>, vector<32x128xf32>
    %155 = vector.extract_strided_slice %149 {offsets = [1, 0], sizes = [31, 128], strides = [1, 1]} : vector<32x128xf32> to vector<31x128xf32>
    %156 = vector.extract_strided_slice %149 {offsets = [0, 0], sizes = [1, 128], strides = [1, 1]} : vector<32x128xf32> to vector<1x128xf32>
    %157 = tpu.concatenate %155, %156 in 0 : vector<31x128xf32>, vector<1x128xf32> -> vector<32x128xf32>
    %cst_45 = arith.constant 0.000000e+00 : f32
    %158 = vector.broadcast %cst_45 : f32 to vector<32x128xf32>
    %159 = arith.select %36, %157, %158 : vector<32x128xi1>, vector<32x128xf32>
    %160 = tpu.concatenate %154, %149, %159 in 1 : vector<32x128xf32>, vector<32x128xf32>, vector<32x128xf32> -> vector<32x384xf32>
    %161 = arith.truncf %160 : vector<32x384xf32> to vector<32x384xbf16>
    %c2 = arith.constant 2 : index
    %c0_46 = arith.constant 0 : index
    %c0_47 = arith.constant 0 : index
    %162 = vector.load %arg1[%c2, %c0_46, %c0_47] : memref<3x384x128xbf16, #tpu.memory_space<vmem>>, vector<1x384x128xbf16>
    %163 = vector.shape_cast %162 : vector<1x384x128xbf16> to vector<384x128xbf16>
    %cst_48 = arith.constant dense<0.000000e+00> : vector<32x128xf32>
    %164 = tpu.matmul %161, %163, %cst_48 {dimension_numbers = #tpu.dot_dimension_numbers<[1], [0], [0], [1], [0, 0, 1, 1], [], []>} : vector<32x384xbf16>, vector<384x128xbf16>, vector<32x128xf32> -> vector<32x128xf32>
    %c2_49 = arith.constant 2 : index
    %c0_50 = arith.constant 0 : index
    %c0_51 = arith.constant 0 : index
    %165 = vector.load %arg2[%c2_49, %c0_50, %c0_51] : memref<3x3x128xf32, #tpu.memory_space<vmem>>, vector<1x3x128xf32>
    %166 = vector.shape_cast %165 : vector<1x3x128xf32> to vector<3x128xf32>
    %167 = vector.extract_strided_slice %166 {offsets = [0, 0], sizes = [1, 128], strides = [1, 1]} : vector<3x128xf32> to vector<1x128xf32>
    %168 = vector.broadcast %167 : vector<1x128xf32> to vector<32x128xf32>
    %169 = arith.addf %164, %168 : vector<32x128xf32>
    %cst_52 = arith.constant 0.000000e+00 : f32
    %170 = vector.broadcast %cst_52 : f32 to vector<32x128xf32>
    %171 = arith.maximumf %169, %170 : vector<32x128xf32>
    %cst_53 = arith.constant dense<0.000000e+00> : vector<128xf32>
    %172 = vector.multi_reduction <add>, %171, %cst_53 [0] : vector<32x128xf32> to vector<128xf32>
    %173 = vector.shape_cast %172 : vector<128xf32> to vector<1x128xf32>
    %174 = arith.mulf %171, %171 : vector<32x128xf32>
    %cst_54 = arith.constant dense<0.000000e+00> : vector<128xf32>
    %175 = vector.multi_reduction <add>, %174, %cst_54 [0] : vector<32x128xf32> to vector<128xf32>
    %176 = vector.shape_cast %175 : vector<128xf32> to vector<1x128xf32>
    %177 = tpu.concatenate %173, %176 in 0 : vector<1x128xf32>, vector<1x128xf32> -> vector<2x128xf32>
    %c8_i32_55 = arith.constant 8 : i32
    %178 = tpu.dynamic_rotate %177 by %c8_i32_55 dim 1 : vector<2x128xf32>, i32 -> vector<2x128xf32>
    %179 = arith.addf %177, %178 : vector<2x128xf32>
    %c16_i32_56 = arith.constant 16 : i32
    %180 = tpu.dynamic_rotate %179 by %c16_i32_56 dim 1 : vector<2x128xf32>, i32 -> vector<2x128xf32>
    %181 = arith.addf %179, %180 : vector<2x128xf32>
    %c32_i32_57 = arith.constant 32 : i32
    %182 = tpu.dynamic_rotate %181 by %c32_i32_57 dim 1 : vector<2x128xf32>, i32 -> vector<2x128xf32>
    %183 = arith.addf %181, %182 : vector<2x128xf32>
    %c64_i32_58 = arith.constant 64 : i32
    %184 = tpu.dynamic_rotate %183 by %c64_i32_58 dim 1 : vector<2x128xf32>, i32 -> vector<2x128xf32>
    %185 = arith.addf %183, %184 : vector<2x128xf32>
    %186 = vector.extract_strided_slice %185 {offsets = [0, 0], sizes = [1, 128], strides = [1, 1]} : vector<2x128xf32> to vector<1x128xf32>
    %cst_59 = arith.constant 0.001953125 : f32
    %187 = vector.broadcast %cst_59 : f32 to vector<1x128xf32>
    %188 = arith.mulf %186, %187 : vector<1x128xf32>
    %189 = vector.extract_strided_slice %185 {offsets = [1, 0], sizes = [1, 128], strides = [1, 1]} : vector<2x128xf32> to vector<1x128xf32>
    %cst_60 = arith.constant 0.001953125 : f32
    %190 = vector.broadcast %cst_60 : f32 to vector<1x128xf32>
    %191 = arith.mulf %189, %190 : vector<1x128xf32>
    %192 = arith.mulf %188, %188 : vector<1x128xf32>
    %193 = arith.subf %191, %192 : vector<1x128xf32>
    %194 = vector.extract_strided_slice %166 {offsets = [1, 0], sizes = [1, 128], strides = [1, 1]} : vector<3x128xf32> to vector<1x128xf32>
    %cst_61 = arith.constant 9.99999974E-6 : f32
    %195 = vector.broadcast %cst_61 : f32 to vector<1x128xf32>
    %196 = arith.addf %193, %195 : vector<1x128xf32>
    %197 = math.rsqrt %196 : vector<1x128xf32>
    %198 = arith.mulf %194, %197 : vector<1x128xf32>
    %199 = vector.extract_strided_slice %166 {offsets = [2, 0], sizes = [1, 128], strides = [1, 1]} : vector<3x128xf32> to vector<1x128xf32>
    %200 = arith.mulf %188, %198 : vector<1x128xf32>
    %201 = arith.subf %199, %200 : vector<1x128xf32>
    %202 = vector.broadcast %198 : vector<1x128xf32> to vector<32x128xf32>
    %203 = arith.mulf %171, %202 : vector<32x128xf32>
    %204 = vector.broadcast %201 : vector<1x128xf32> to vector<32x128xf32>
    %205 = arith.addf %203, %204 : vector<32x128xf32>
    %206 = arith.addf %205, %93 : vector<32x128xf32>
    %c0_62 = arith.constant 0 : index
    %c0_63 = arith.constant 0 : index
    %207 = vector.load %arg3[%c0_62, %c0_63] : memref<32x128xf32, #tpu.memory_space<vmem>>, vector<32x128xf32>
    tpu.vector_store %arg3[%c0_62, %c0_63], %206 {strides = array<i32>} : memref<32x128xf32, #tpu.memory_space<vmem>>, vector<32x128xf32>,
    return
  }
}

</mosaic_0001>

<bundles_post_ra>
// kernel: tpu_custom_call.1
= control target key start
LH: loop header
LB: loop body
LE: loop exit
PB: predicated region body
PF: predicated region fallthrough
CT: control target
= control target key end

     0   :  { %8 = vsyncpa [#allocation3], 0  ;;  %s2155_s0 = inlined_call_operand.hbm [shape: f32[32,128], index: 0, kind: input, shape index: {}]   ;;  %s2156_s1 = inlined_call_operand.hbm [shape: bf16[3,384,128], index: 1, kind: input, shape index: {}]   ;;  %s2157_s2 = inlined_call_operand.hbm [shape: f32[3,3,128], index: 2, kind: input, shape index: {}]   ;;  %s2158_s3 = inlined_call_operand.hbm [shape: f32[32,128], index: 3, kind: output, shape index: {}]  }
   0x1   :  { %9 = vsyncpa [#allocation6], 0 }
   0x2   :  { %10 = vsyncpa [#allocation4], 0  ;;  %s1852_s12 = smov [#allocation5]   ;;  %s1758_s16 = scalar_lea.hbm %s2156_s1, 9216 }
   0x3   :  { %s28_s13 = sshll.u32 %s1852_s12, 4  ;;  %p1759_p0 = scmp.ne.s32.totalorder %s2156_s1, %s1758_s16  ;;  %s29_s13 = int_to_ptr.vmem [resolvable:$true] %s28_s13 }
   0x4   :  { %p1762_p1 = scmp.lt.u32.totalorder %s1758_s16, %s2156_s1 }
   0x6   :  { %p1764_p2 = pnand %p1762_p1, %p1759_p0 }
   0x8   :  { %1767 = shalt.err (!%p1764_p2)
}
   0x9   :  { %s1768_s21 = scalar_lea.vmem %s29_s13, 9216  ;;  %p1773_p4 = scmp.lt.s32.totalorder %s29_s13, %s29_s13 }
   0xa   :  { %p1769_p3 = scmp.ne.s32.totalorder %s29_s13, %s1768_s21  ;;  %p1774_p5 = scmp.lt.s32.totalorder %s1768_s21, %s1768_s21 }
   0xc   :  { %p1775_p6 = por %p1774_p5, %p1773_p4 }
   0xe   :  { %p1776_p7 = pnand %p1775_p6, %p1769_p3 }
  0x10   :  { %1779 = shalt.err (!%p1776_p7)
}
  0x11   :  { %s1853_s22 = smov 64   ;;  %s1854_s23 = smov 4  }
  0x12   :  { %34 = dma.hbm_to_vmem [thread:$0]  %s2156_s1, 9216, %s29_s13, [#allocation6], %s1853_s22, %s1853_s22, %s1854_s23  }
  0x13   :  { %s1855_s26 = smov [#allocation2]   ;;  %s1780_s30 = scalar_lea.hbm %s2155_s0, 512 }
  0x14   :  { %s16_s27 = sshll.u32 %s1855_s26, 4  ;;  %p1781_p8 = scmp.ne.s32.totalorder %s2155_s0, %s1780_s30  ;;  %s17_s27 = int_to_ptr.vmem [resolvable:$true] %s16_s27 }
  0x15   :  { %p1784_p9 = scmp.lt.u32.totalorder %s1780_s30, %s2155_s0 }
  0x17   :  { %p1786_p10 = pnand %p1784_p9, %p1781_p8 }
  0x19   :  { %1789 = shalt.err (!%p1786_p10)
}
  0x1a   :  { %s1790_s8 = scalar_lea.vmem %s17_s27, 512  ;;  %p1795_p12 = scmp.lt.s32.totalorder %s17_s27, %s17_s27 }
  0x1b   :  { %p1791_p11 = scmp.ne.s32.totalorder %s17_s27, %s1790_s8  ;;  %p1796_p13 = scmp.lt.s32.totalorder %s1790_s8, %s1790_s8 }
  0x1d   :  { %p1797_p0 = por %p1796_p13, %p1795_p12 }
  0x1f   :  { %p1798_p1 = pnand %p1797_p0, %p1791_p11 }
  0x21   :  { %1801 = shalt.err (!%p1798_p1)
}
  0x22   :  { %s1856_s1 = smov 128   ;;  %s1857_s9 = smov 8  }
  0x23   :  { %22 = dma.hbm_to_vmem [thread:$0]  %s2155_s0, 512, %s17_s27, [#allocation3], %s1856_s1, %s1856_s1, %s1857_s9  }
  0x24   :  { %s1858_s12 = smov [#allocation7]   ;;  %s1802_s16 = scalar_lea.hbm %s2157_s2, 192 }
  0x25   :  { %s40_s13 = sshll.u32 %s1858_s12, 4  ;;  %p1803_p2 = scmp.ne.s32.totalorder %s2157_s2, %s1802_s16  ;;  %s41_s13 = int_to_ptr.vmem [resolvable:$true] %s40_s13 }
  0x26   :  { %p1806_p3 = scmp.lt.u32.totalorder %s1802_s16, %s2157_s2 }
  0x28   :  { %p1808_p4 = pnand %p1806_p3, %p1803_p2 }
  0x2a   :  { %1811 = shalt.err (!%p1808_p4)
}
  0x2b   :  { %s1812_s21 = scalar_lea.vmem %s41_s13, 192  ;;  %p1817_p6 = scmp.lt.s32.totalorder %s41_s13, %s41_s13 }
  0x2c   :  { %p1813_p5 = scmp.ne.s32.totalorder %s41_s13, %s1812_s21  ;;  %p1818_p7 = scmp.lt.s32.totalorder %s1812_s21, %s1812_s21 }
  0x2e   :  { %p1819_p8 = por %p1818_p7, %p1817_p6 }
  0x30   :  { %p1820_p9 = pnand %p1819_p8, %p1813_p5 }
  0x32   :  { %1823 = shalt.err (!%p1820_p9)
}
  0x33   :  { %46 = dma.hbm_to_vmem [thread:$0]  %s2157_s2, 192, %s41_s13, [#allocation6], %s1853_s22, %s1853_s22, %s1854_s23  }
  0x34   :  { %1846 = dma.done.wait [#allocation3], 512  }
  0x35   :  { %1847 = vsyncadd [#allocation3], 4294966784 }
  0x36   :  { %1848 = dma.done.wait [#allocation6], 9408  }
  0x37   :  { %1849 = vsyncadd [#allocation6], 4294957888  ;;  %v1680_v0 = vld [vmem:[#allocation5 + $0x40] sm:$0xff]   ;;  %v1682_v2 = vld [vmem:[#allocation5 + $0x48] sm:$0xff]   ;;  %v57_v8 = vlaneseq  ;;  %vm128_vm0 = vcmask 1040384   ;;  %vm144_vm1 = vcmask 1046528  }
  0x38   :  { %v1681_v1 = vld [vmem:[#allocation5] sm:$0xff]   ;;  %1495 = vmatprep.subr.bf16.mxu0 %v1680_v0  ;;  %v1684_v4 = vld [vmem:[#allocation5 + $0x8] sm:$0xff]   ;;  %v1685_v5 = vld [vmem:[#allocation5 + $0x50] sm:$0xff]   ;;  %vm1859_vm5 = vmmov 1   ;;  %s1860_s2 = smov 16   ;;  %s1861_s23 = smov 32  }
  0x39   :  { %1496 = vmatpush3.bf16.msra.mxu0 %v1681_v1  ;;  %v1683_v3 = vld [vmem:[#allocation5 + $0x80] sm:$0xff]   ;;  %v1686_v6 = vld [vmem:[#allocation5 + $0x88] sm:$0xff]   ;;  %v1687_v7 = vld [vmem:[#allocation5 + $0x10] sm:$0xff]   ;;  %v1928_v13 = vshrl.u32 %v57_v8, 7 }
  0x3a   :  { %1497 = vmatprep.subr.bf16.mxu0 %v1682_v2  ;;  %1609 = vmatprep.subr.bf16.mxu1 %v1683_v3  ;;  %v1688_v9 = vld [vmem:[#allocation5 + $0x58] sm:$0xff]   ;;  %v1689_v10 = vld [vmem:[#allocation5 + $0x90] sm:$0xff]   ;;  %v1691_v12 = vld [vmem:[#allocation5 + $0x60] sm:$0xff]  }
  0x3b   :  { %1610 = vmatpush3.bf16.msra.mxu1 %v1683_v3  ;;  %v1690_v11 = vld [vmem:[#allocation5 + $0x18] sm:$0xff]   ;;  %v1693_v15 = vld [vmem:[#allocation5 + $0x20] sm:$0xff]   ;;  %v59_v17 = vadd.s32 8, %v1928_v13  ;;  %v1694_v18 = vld [vmem:[#allocation5 + $0x68] sm:$0xff]   ;;  %v66_v19 = vand.u32 15, %v1928_v13  ;;  %v61_v20 = vadd.s32 24, %v1928_v13 }
  0x3c   :  { %1611 = vmatprep.subr.bf16.mxu1 %v1686_v6  ;;  %v1692_v14 = vld [vmem:[#allocation5 + $0x98] sm:$0xff]   ;;  %v1695_v16 = vld [vmem:[#allocation5 + $0xa0] sm:$0xff]   ;;  %v1696_v21 = vld [vmem:[#allocation5 + $0x28] sm:$0xff]   ;;  %v60_v22 = vadd.s32 16, %v1928_v13  ;;  %v1989_v2 = vsub.s32 0, %v1928_v13 }
  0x3d   :  { %1498 = vmatpush3.bf16.msra.mxu0 %v1684_v4  ;;  %v1698_v23 = vld [vmem:[#allocation5 + $0xa8] sm:$0xff]   ;;  %v73_v24 = vand.u32 15, %v59_v17  ;;  %v1697_v25 = vld [vmem:[#allocation5 + $0x70] sm:$0xff]   ;;  %v87_v27 = vand.u32 15, %v61_v20  ;;  %v1700_v28 = vld [vmem:[#allocation5 + $0x78] sm:$0xff]   ;;  %vm1934_vm2 = vcmp.ne.s32.totalorder %v66_v19, 0 }
  0x3e   :  { %1499 = vmatprep.subr.bf16.mxu0 %v1685_v5  ;;  %v1699_v26 = vld [vmem:[#allocation5 + $0x30] sm:$0xff]   ;;  %v118_v30 = vld [vmem:[#allocation2] sm:$0xff]  ;;  %v119_v31 = vld [vmem:[#allocation2 + $0x8] sm:$0xff]  ;;  %v80_v35 = vand.u32 15, %v60_v22 }
  0x3f   :  { %1612 = vmatpush3.bf16.msra.mxu1 %v1686_v6  ;;  %v1701_v29 = vld [vmem:[#allocation5 + $0xb0] sm:$0xff]   ;;  %v121_v33 = vld [vmem:[#allocation2 + $0x18] sm:$0xff]  ;;  %vm1938_vm3 = vcmp.ne.s32.totalorder %v73_v24, 15  ;;  %v129_v36 = vrot.slane %v118_v30, 7  ;;  %v130_v37 = vrot.slane %v119_v31, 7  ;;  %v145_v38 = vrot.slane %v118_v30, 1  ;;  %vm1949_vm6 = vmpackc.low %vm1859_vm5, %vm1934_vm2 }
  0x40   :  { %1613 = vmatprep.subr.bf16.mxu1 %v1689_v10  ;;  %v146_v39 = vrot.slane %v119_v31, 1  ;;  %v1702_v40 = vld [vmem:[#allocation5 + $0x38] sm:$0xff]   ;;  %v163_v41 = vpack.c.bf16 %v119_v31, %v118_v30  ;;  %v123_v42 = vrot.slane %v121_v33, 7  ;;  %v120_v44 = vld [vmem:[#allocation2 + $0x10] sm:$0xff]  ;;  %vm1942_vm4 = vcmp.ne.s32.totalorder %v87_v27, 15  ;;  %vm1959_vm7 = vmpackc.low %vm1938_vm3, %vm1859_vm5 }
  0x41   :  { %1500 = vmatpush3.bf16.msra.mxu0 %v1687_v7  ;;  %v1703_v43 = vld [vmem:[#allocation5 + $0xb8] sm:$0xff]   ;;  %v148_v48 = vrot.slane %v120_v44, 1  ;;  %v150_v49 = vrot.slane %v121_v33, 1  ;;  %v131_v50 = vsel %vm128_vm0, %v129_v36, %v130_v37  ;;  %v132_v53 = vrot.slane %v120_v44, 7  ;;  %vm1967_vm8 = vmpackc.low %vm1942_vm4, %vm1859_vm5  ;;  %v1991_v3 = vld [vmem:[#allocation7] sm:$0x7] }
  0x42   :  { %1501 = vmatprep.subr.bf16.mxu0 %v1688_v9  ;;  %v147_v47 = vsel %vm144_vm1, %v145_v38, %v146_v39  ;;  %v139_v51 = vsel %vm128_vm0, %v123_v42, %v129_v36  ;;  %397 = vmatprep.mubr.bf16.mxu0 %v163_v41  ;;  %vm112_vm9 = vcmp.ne.s32.totalorder %v80_v35, 0  ;;  %v166_v60 = vpack.c.bf16 %v121_v33, %v120_v44 }
  0x43   :  { %1614 = vmatpush3.bf16.msra.mxu1 %v1689_v10  ;;  %v149_v54 = vsel %vm144_vm1, %v146_v39, %v148_v48  ;;  %v1412_v57 = vpack.c.bf16 %v131_v50, %v139_v51  ;;  %v151_v58 = vsel %vm144_vm1, %v148_v48, %v150_v49  ;;  %v157_v59 = vsel %vm144_vm1, %v150_v49, %v145_v38  ;;  %vm1974_vm10 = vmpackc.low %vm1859_vm5, %vm112_vm9 }
  0x44   :  { %1615 = vmatprep.subr.bf16.mxu1 %v1692_v14  ;;  %v1418_v56 = vpack.c.bf16 %v149_v54, %v147_v47  ;;  %v1421_v62 = vpack.c.bf16 %v157_v59, %v151_v58  ;;  %v133_v63 = vsel %vm128_vm0, %v130_v37, %v132_v53  ;;  %v134_v0 = vsel %vm128_vm0, %v132_v53, %v123_v42 }
  0x45   :  { %1502 = vmatpush3.bf16.msra.mxu0 %v1690_v11  ;;  %v1415_v1 = vpack.c.bf16 %v134_v0, %v133_v63  ;;  %v220_v5 = vrot.slane %v1991_v3, %v1989_v2 }
  0x46   :  { %1503 = vmatprep.subr.bf16.mxu0 %v1691_v12  ;;  %1625 = vmatprep.mubr.msk.bf16.mxu1 %vm1959_vm7, %v1418_v56 }
  0x47   :  { %1616 = vmatpush3.bf16.msra.mxu1 %v1692_v14 }
  0x48   :  { %1617 = vmatprep.subr.bf16.mxu1 %v1695_v16 }
  0x49   :  { %1504 = vmatpush3.bf16.msra.mxu0 %v1693_v15 }
  0x4a   :  { %1505 = vmatprep.subr.bf16.mxu0 %v1694_v18 }
  0x4b   :  { %1618 = vmatpush3.bf16.msra.mxu1 %v1695_v16 }
  0x4c   :  { %1619 = vmatprep.subr.bf16.mxu1 %v1698_v23 }
  0x4d   :  { %1506 = vmatpush3.bf16.msra.mxu0 %v1696_v21 }
  0x4e   :  { %1507 = vmatprep.subr.bf16.mxu0 %v1697_v25 }
  0x4f   :  { %1620 = vmatpush3.bf16.msra.mxu1 %v1698_v23 }
  0x50   :  { %1621 = vmatprep.subr.bf16.mxu1 %v1701_v29 }
  0x51   :  { %1508 = vmatpush3.bf16.msra.mxu0 %v1699_v26 }
  0x52   :  { %1509 = vmatprep.subr.bf16.mxu0 %v1700_v28 }
  0x53   :  { %1622 = vmatpush3.bf16.msra.mxu1 %v1701_v29 }
  0x54   :  { %1623 = vmatprep.subr.bf16.mxu1 %v1703_v43 }
  0x55   :  { %1510 = vmatpush3.bf16.msra.mxu0 %v1702_v40 }
  0x57   :  { %1624 = vmatpush3.bf16.msra.mxu1 %v1703_v43 }
  0x58   :  { %1413 = vmatmul.mubr.msk.bf16.vlgmr.msra.gmra.mrb[0].mxu0 %vm1949_vm6, %v1412_v57 }
  0x59   :  { %405 = vmatprep.mubr.bf16.mxu0 %v166_v60 }
  0x5a   :  { %1626 = vmatmul.mubr.msk.bf16.vlgmr.msra.gmra.mrb[0].mxu1 %vm1967_vm8, %v1421_v62 }
  0x60   :  { %1416 = vmatmul.mubr.msk.bf16.gmra.mrb[4].mxu0 %vm1974_vm10, %v1415_v1  ;;  %v1704_v1 = vld [vmem:[#allocation5 + $0x100] sm:$0xff]  }
  0x61   :  { %1533 = vmatprep.subr.bf16.mxu0 %v1704_v1 }
 0x12b   :  { %v1511_v4 = vpop.f32.mrb[0].mxu0 }
 0x12c   :  { %v1512_v6 = vpop.f32.mrb[1].mxu0 }
 0x12d   :  { %v1513_v7 = vadd.f32 %v1512_v6, %v1511_v4  ;;  %v1514_v8 = vpop.f32.mrb[2].mxu0  ;;  %v1627_v10 = vpop.f32.mrb[0].mxu1  ;;  %v1705_v4 = vld [vmem:[#allocation5 + $0xc0] sm:$0xff]  }
 0x12e   :  { %v1515_v9 = vpop.f32.mrb[3].mxu0  ;;  %v448_v14 = vpop.f32.mrb[1].mxu1  ;;  %1534 = vmatpush3.bf16.msra.mxu0 %v1705_v4 }
 0x12f   :  { %v1516_v11 = vadd.f32 %v1515_v9, %v1514_v8  ;;  %v400_v12 = vadd.f32 %v1513_v7, %v220_v5  ;;  %v1628_v15 = vpop.f32.mrb[2].mxu1  ;;  %v1707_v8 = vld [vmem:[#allocation5 + $0x108] sm:$0xff]  }
 0x130   :  { %v451_v18 = vpop.f32.mrb[3].mxu1  ;;  %v1708_v9 = vld [vmem:[#allocation5 + $0xc8] sm:$0xff]   ;;  %1535 = vmatprep.subr.bf16.mxu0 %v1707_v8 }
 0x131   :  { %v449_v16 = vadd.f32 %v448_v14, %v400_v12  ;;  %v403_v17 = vadd.f32 %v1516_v11, %v220_v5  ;;  %v1710_v11 = vld [vmem:[#allocation5 + $0x110] sm:$0xff]  }
 0x132   :  { %1536 = vmatpush3.bf16.msra.mxu0 %v1708_v9  ;;  %v1711_v12 = vld [vmem:[#allocation5 + $0xd0] sm:$0xff]  }
 0x133   :  { %v452_v19 = vadd.f32 %v451_v18, %v403_v17  ;;  %v1517_v20 = vpop.f32.mrb[4].mxu0  ;;  %v1997_v26 = vmax.f32 %v449_v16, 0.0  ;;  %v1712_v14 = vld [vmem:[#allocation5 + $0x150] sm:$0xff]   ;;  %1537 = vmatprep.subr.bf16.mxu0 %v1710_v11  ;;  %v1714_v16 = vld [vmem:[#allocation5 + $0xd8] sm:$0xff]   ;;  %v1716_v18 = vld [vmem:[#allocation5 + $0x120] sm:$0xff]  }
 0x134   :  { %v1518_v21 = vpop.f32.mrb[5].mxu0  ;;  %v1715_v17 = vld [vmem:[#allocation5 + $0x158] sm:$0xff]  }
 0x135   :  { %v1995_v22 = vmax.f32 %v452_v19, 0.0  ;;  %v1519_v23 = vadd.f32 %v1518_v21, %v1517_v20  ;;  %v1520_v24 = vpop.f32.mrb[6].mxu0  ;;  %v476_v32 = vmul.f32 %v1997_v26, %v1997_v26  ;;  %v1717_v19 = vld [vmem:[#allocation5 + $0xe0] sm:$0xff]   ;;  %v1719_v21 = vld [vmem:[#allocation5 + $0x128] sm:$0xff]  }
 0x136   :  { %v1521_v25 = vpop.f32.mrb[7].mxu0  ;;  %1538 = vmatpush3.bf16.msra.mxu0 %v1711_v12  ;;  %v1718_v20 = vld [vmem:[#allocation5 + $0x160] sm:$0xff]  }
 0x137   :  { %v408_v27 = vadd.f32 %v1519_v23, %v220_v5  ;;  %v1522_v28 = vadd.f32 %v1521_v25, %v1520_v24  ;;  %v477_v29 = vmul.f32 %v1995_v22, %v1995_v22  ;;  %v467_v33 = vadd.f32 %v1995_v22, %v1997_v26  ;;  %v1720_v23 = vld [vmem:[#allocation5 + $0xe8] sm:$0xff]   ;;  %v1722_v25 = vld [vmem:[#allocation5 + $0x130] sm:$0xff]  }
 0x138   :  { %v1721_v24 = vld [vmem:[#allocation5 + $0x168] sm:$0xff]  }
 0x139   :  { %v457_v30 = vadd.f32 %v1627_v10, %v408_v27  ;;  %v411_v31 = vadd.f32 %v1522_v28, %v220_v5  ;;  %v480_v36 = vadd.f32 %v477_v29, %v476_v32  ;;  %v1706_v5 = vld [vmem:[#allocation5 + $0x140] sm:$0xff]   ;;  %v1709_v10 = vld [vmem:[#allocation5 + $0x148] sm:$0xff]   ;;  %v1723_v27 = vld [vmem:[#allocation5 + $0xf0] sm:$0xff]  }
 0x13a   :  { %1629 = vmatprep.subr.bf16.mxu1 %v1706_v5  ;;  %v1724_v28 = vld [vmem:[#allocation5 + $0x170] sm:$0xff]   ;;  %v1725_v29 = vld [vmem:[#allocation5 + $0x138] sm:$0xff]  }
 0x13b   :  { %v2005_v34 = vmax.f32 %v457_v30, 0.0  ;;  %v460_v35 = vadd.f32 %v1628_v15, %v411_v31  ;;  %1630 = vmatpush3.bf16.msra.mxu1 %v1706_v5  ;;  %v1713_v15 = vld [vmem:[#allocation5 + $0x118] sm:$0xff]  }
 0x13c   :  { %1631 = vmatprep.subr.bf16.mxu1 %v1709_v10  ;;  %1539 = vmatprep.subr.bf16.mxu0 %v1713_v15  ;;  %v1726_v30 = vld [vmem:[#allocation5 + $0xf8] sm:$0xff]  }
 0x13d   :  { %v468_v37 = vadd.f32 %v467_v33, %v2005_v34  ;;  %v478_v38 = vmul.f32 %v2005_v34, %v2005_v34  ;;  %v2010_v39 = vmax.f32 %v460_v35, 0.0  ;;  %1540 = vmatpush3.bf16.msra.mxu0 %v1714_v16  ;;  %v1727_v31 = vld [vmem:[#allocation5 + $0x178] sm:$0xff]  }
 0x13e   :  { %1541 = vmatprep.subr.bf16.mxu0 %v1716_v18  ;;  %v2070_v18 = vld [vmem:[#allocation7 + $0x4] sm:$0x7] }
 0x13f   :  { %v481_v40 = vadd.f32 %v480_v36, %v478_v38  ;;  %v469_v41 = vadd.f32 %v468_v37, %v2010_v39  ;;  %v479_v42 = vmul.f32 %v2010_v39, %v2010_v39  ;;  %1632 = vmatpush3.bf16.msra.mxu1 %v1709_v10 }
 0x140   :  { %1633 = vmatprep.subr.bf16.mxu1 %v1712_v14 }
 0x141   :  { %v470_v43 = vrot.slane %v469_v41, 4  ;;  %v482_v44 = vadd.f32 %v481_v40, %v479_v42  ;;  %1542 = vmatpush3.bf16.msra.mxu0 %v1717_v19 }
 0x142   :  { %1543 = vmatprep.subr.bf16.mxu0 %v1719_v21 }
 0x143   :  { %v471_v45 = vadd.f32 %v470_v43, %v469_v41  ;;  %v483_v47 = vrot.slane %v482_v44, 4  ;;  %1634 = vmatpush3.bf16.msra.mxu1 %v1712_v14  ;;  %v2022_v43 = vsub.s32 1, %v1928_v13 }
 0x144   :  { %1635 = vmatprep.subr.bf16.mxu1 %v1715_v17 }
 0x145   :  { %v472_v48 = vrot.slane %v471_v45, 2  ;;  %v484_v49 = vadd.f32 %v483_v47, %v482_v44  ;;  %1544 = vmatpush3.bf16.msra.mxu0 %v1720_v23 }
 0x146   :  { %1545 = vmatprep.subr.bf16.mxu0 %v1722_v25 }
 0x147   :  { %v473_v50 = vadd.f32 %v472_v48, %v471_v45  ;;  %v485_v51 = vrot.slane %v484_v49, 2  ;;  %1636 = vmatpush3.bf16.msra.mxu1 %v1715_v17  ;;  %v2026_v48 = vsub.s32 2, %v1928_v13 }
 0x148   :  { %1637 = vmatprep.subr.bf16.mxu1 %v1718_v20 }
 0x149   :  { %v474_v53 = vrot.slane %v473_v50, 1  ;;  %v486_v54 = vadd.f32 %v485_v51, %v484_v49  ;;  %1546 = vmatpush3.bf16.msra.mxu0 %v1723_v27 }
 0x14a   :  { %1547 = vmatprep.subr.bf16.mxu0 %v1725_v29 }
 0x14b   :  { %v487_v56 = vrot.slane %v486_v54, 1  ;;  %v475_v57 = vadd.f32 %v474_v53, %v473_v50  ;;  %1638 = vmatpush3.bf16.msra.mxu1 %v1718_v20  ;;  %v633_v20 = vrot.slane %v2070_v18, %v1989_v2 }
 0x14c   :  { %1639 = vmatprep.subr.bf16.mxu1 %v1721_v24 }
 0x14d   :  { %v488_v58 = vadd.f32 %v487_v56, %v486_v54  ;;  %1548 = vmatpush3.bf16.msra.mxu0 %v1726_v30 }
 0x14f   :  { %v489_v59 = vsel %vm128_vm0, %v475_v57, %v488_v58  ;;  %1640 = vmatpush3.bf16.msra.mxu1 %v1721_v24 }
 0x150   :  { %490 = vrot.lane.b32.xlu0 %v489_v59, %s1857_s9  ;;  %1641 = vmatprep.subr.bf16.mxu1 %v1724_v28 }
 0x153   :  { %1642 = vmatpush3.bf16.msra.mxu1 %v1724_v28 }
 0x154   :  { %1643 = vmatprep.subr.bf16.mxu1 %v1727_v31 }
 0x157   :  { %1644 = vmatpush3.bf16.msra.mxu1 %v1727_v31 }
 0x1c2   :  { %v491_v60 = vpop.permute.xlu0 %490 }
 0x1c3   :  { %v492_v62 = vadd.f32 %v491_v60, %v489_v59 }
 0x1c5   :  { %493 = vrot.lane.b32.xlu0 %v492_v62, %s1860_s2 }
 0x237   :  { %v494_v63 = vpop.permute.xlu0 %493 }
 0x238   :  { %v495_v0 = vadd.f32 %v494_v63, %v492_v62 }
 0x23a   :  { %496 = vrot.lane.b32.xlu1 %v495_v0, %s1861_s23 }
 0x2ac   :  { %v497_v6 = vpop.permute.xlu1 %496 }
 0x2ad   :  { %v498_v7 = vadd.f32 %v497_v6, %v495_v0 }
 0x2af   :  { %499 = vrot.lane.b32.xlu1 %v498_v7, %s1853_s22 }
 0x321   :  { %v500_v32 = vpop.permute.xlu1 %499 }
 0x322   :  { %v501_v33 = vadd.f32 %v500_v32, %v498_v7 }
 0x324   :  { %v502_v35 = vmul.f32 0.001953125, %v501_v33 }
 0x326   :  { %v503_v36 = vmul.f32 %v502_v35, %v502_v35 }
 0x328   :  { %v505_v37 = vrot.slane %v503_v36, 7 }
 0x32a   :  { %v507_v38 = vsub.f32 %v502_v35, %v505_v37 }
 0x32c   :  { %v508_v40 = vadd.f32 1e-05, %v507_v38 }
 0x32e   :  { %1752 = vrsqrt.f32 %v508_v40 }
 0x338   :  { %v1753_v41 = vpop.eup %1752 }
 0x339   :  { %v510_v42 = vmul.f32 %v1753_v41, %v1991_v3 }
 0x33b   :  { %v512_v44 = vrot.slane %v510_v42, 1  ;;  %v522_v47 = vrot.slane %v510_v42, %v2022_v43 }
 0x33d   :  { %v514_v45 = vmul.f32 %v512_v44, %v502_v35  ;;  %v525_v51 = vmul.f32 %v522_v47, %v2005_v34  ;;  %v526_v53 = vmul.f32 %v522_v47, %v2010_v39  ;;  %v523_v56 = vmul.f32 %v522_v47, %v1997_v26 }
 0x33e   :  { %v524_v57 = vmul.f32 %v522_v47, %v1995_v22 }
 0x33f   :  { %v516_v49 = vrot.slane %v514_v45, 6 }
 0x341   :  { %v518_v50 = vsub.f32 %v1991_v3, %v516_v49 }
 0x343   :  { %v530_v54 = vrot.slane %v518_v50, %v2026_v48 }
 0x345   :  { %v2034_v58 = vadd.f32 %v530_v54, %v525_v51  ;;  %v2036_v59 = vadd.f32 %v530_v54, %v526_v53  ;;  %v2038_v60 = vadd.f32 %v530_v54, %v523_v56  ;;  %v2040_v13 = vadd.f32 %v530_v54, %v524_v57 }
 0x347   :  { %v541_v3 = vrot.slane %v2038_v60, 7  ;;  %v542_v34 = vrot.slane %v2040_v13, 7  ;;  %v574_v39 = vpack.c.bf16 %v2040_v13, %v2038_v60  ;;  %v536_v62 = vrot.slane %v2036_v59, 7 }
 0x348   :  { %v556_v26 = vrot.slane %v2038_v60, 1  ;;  %v557_v22 = vrot.slane %v2040_v13, 1  ;;  %v559_v63 = vrot.slane %v2034_v58, 1  ;;  %v561_v4 = vrot.slane %v2036_v59, 1 }
 0x349   :  { %810 = vmatprep.mubr.bf16.mxu0 %v574_v39  ;;  %v543_v0 = vsel %vm128_vm0, %v541_v3, %v542_v34  ;;  %v551_v1 = vsel %vm128_vm0, %v536_v62, %v541_v3  ;;  %v577_v8 = vpack.c.bf16 %v2036_v59, %v2034_v58  ;;  %v544_v12 = vrot.slane %v2034_v58, 7 }
 0x34a   :  { %v1448_v5 = vpack.c.bf16 %v543_v0, %v551_v1  ;;  %v558_v6 = vsel %vm144_vm1, %v556_v26, %v557_v22  ;;  %v560_v7 = vsel %vm144_vm1, %v557_v22, %v559_v63  ;;  %v562_v10 = vsel %vm144_vm1, %v559_v63, %v561_v4 }
 0x34b   :  { %v1454_v9 = vpack.c.bf16 %v560_v7, %v558_v6  ;;  %v568_v11 = vsel %vm144_vm1, %v561_v4, %v556_v26  ;;  %v545_v15 = vsel %vm128_vm0, %v542_v34, %v544_v12  ;;  %v546_v16 = vsel %vm128_vm0, %v544_v12, %v536_v62 }
 0x34c   :  { %1449 = vmatmul.mubr.msk.bf16.vlgmr.msra.gmra.mrb[8].mxu0 %vm1949_vm6, %v1448_v5  ;;  %v1457_v14 = vpack.c.bf16 %v568_v11, %v562_v10  ;;  %v1451_v17 = vpack.c.bf16 %v546_v16, %v545_v15 }
 0x34d   :  { %1645 = vmatprep.mubr.msk.bf16.mxu1 %vm1959_vm7, %v1454_v9  ;;  %818 = vmatprep.mubr.bf16.mxu0 %v577_v8 }
 0x34e   :  { %1646 = vmatmul.mubr.msk.bf16.vlgmr.msra.gmra.mrb[4].mxu1 %vm1967_vm8, %v1457_v14 }
 0x354   :  { %1452 = vmatmul.mubr.msk.bf16.gmra.mrb[12].mxu0 %vm1974_vm10, %v1451_v17 }
 0x41f   :  { %v1549_v19 = vpop.f32.mrb[8].mxu0 }
 0x420   :  { %v1550_v21 = vpop.f32.mrb[9].mxu0 }
 0x421   :  { %v1551_v23 = vadd.f32 %v1550_v21, %v1549_v19  ;;  %v1647_v24 = vpop.f32.mrb[4].mxu1  ;;  %v1552_v25 = vpop.f32.mrb[10].mxu0 }
 0x422   :  { %v861_v27 = vpop.f32.mrb[5].mxu1  ;;  %v1553_v28 = vpop.f32.mrb[11].mxu0 }
 0x423   :  { %v813_v29 = vadd.f32 %v1551_v23, %v633_v20  ;;  %v1554_v30 = vadd.f32 %v1553_v28, %v1552_v25  ;;  %v1648_v31 = vpop.f32.mrb[6].mxu1  ;;  %v1729_v28 = vld [vmem:[#allocation5 + $0x180] sm:$0xff]  }
 0x424   :  { %v864_v32 = vpop.f32.mrb[7].mxu1 }
 0x425   :  { %v862_v33 = vadd.f32 %v861_v27, %v813_v29  ;;  %v816_v35 = vadd.f32 %v1554_v30, %v633_v20  ;;  %v1728_v27 = vld [vmem:[#allocation5 + $0x1c0] sm:$0xff]   ;;  %v1731_v30 = vld [vmem:[#allocation5 + $0x1c8] sm:$0xff]  }
 0x426   :  { %v1730_v29 = vld [vmem:[#allocation5 + $0x200] sm:$0xff]   ;;  %1571 = vmatprep.subr.bf16.mxu0 %v1728_v27 }
 0x427   :  { %v865_v36 = vadd.f32 %v864_v32, %v816_v35  ;;  %v1555_v37 = vpop.f32.mrb[12].mxu0  ;;  %v2076_v45 = vmax.f32 %v862_v33, 0.0  ;;  %1572 = vmatpush3.bf16.msra.mxu0 %v1729_v28  ;;  %1649 = vmatprep.subr.bf16.mxu1 %v1730_v29  ;;  %v1733_v32 = vld [vmem:[#allocation5 + $0x208] sm:$0xff]   ;;  %v1734_v33 = vld [vmem:[#allocation5 + $0x1d0] sm:$0xff]  }
 0x428   :  { %v1556_v38 = vpop.f32.mrb[13].mxu0  ;;  %1650 = vmatpush3.bf16.msra.mxu1 %v1730_v29  ;;  %1573 = vmatprep.subr.bf16.mxu0 %v1731_v30  ;;  %v1735_v35 = vld [vmem:[#allocation5 + $0x190] sm:$0xff]  }
 0x429   :  { %v2074_v40 = vmax.f32 %v865_v36, 0.0  ;;  %v1557_v41 = vadd.f32 %v1556_v38, %v1555_v37  ;;  %v1558_v42 = vpop.f32.mrb[14].mxu0  ;;  %v889_v54 = vmul.f32 %v2076_v45, %v2076_v45  ;;  %1651 = vmatprep.subr.bf16.mxu1 %v1733_v32  ;;  %v1736_v36 = vld [vmem:[#allocation5 + $0x210] sm:$0xff]   ;;  %v1737_v37 = vld [vmem:[#allocation5 + $0x1d8] sm:$0xff]  }
 0x42a   :  { %v1559_v44 = vpop.f32.mrb[15].mxu0  ;;  %v1738_v38 = vld [vmem:[#allocation5 + $0x198] sm:$0xff]  }
 0x42b   :  { %v821_v47 = vadd.f32 %v1557_v41, %v633_v20  ;;  %v1560_v49 = vadd.f32 %v1559_v44, %v1558_v42  ;;  %v890_v50 = vmul.f32 %v2074_v40, %v2074_v40  ;;  %v880_v56 = vadd.f32 %v2074_v40, %v2076_v45  ;;  %v1739_v41 = vld [vmem:[#allocation5 + $0x218] sm:$0xff]   ;;  %v1740_v42 = vld [vmem:[#allocation5 + $0x1e0] sm:$0xff]  }
 0x42c   :  { %1652 = vmatpush3.bf16.msra.mxu1 %v1733_v32  ;;  %v1741_v44 = vld [vmem:[#allocation5 + $0x1a0] sm:$0xff]  }
 0x42d   :  { %v870_v51 = vadd.f32 %v1647_v24, %v821_v47  ;;  %v824_v53 = vadd.f32 %v1560_v49, %v633_v20  ;;  %v893_v34 = vadd.f32 %v890_v50, %v889_v54  ;;  %1653 = vmatprep.subr.bf16.mxu1 %v1736_v36  ;;  %v1742_v47 = vld [vmem:[#allocation5 + $0x220] sm:$0xff]   ;;  %v1743_v49 = vld [vmem:[#allocation5 + $0x1e8] sm:$0xff]   ;;  %v1747_v54 = vld [vmem:[#allocation5 + $0x1b0] sm:$0xff]  }
 0x42e   :  { %v1744_v50 = vld [vmem:[#allocation5 + $0x1a8] sm:$0xff]  }
 0x42f   :  { %v2084_v57 = vmax.f32 %v870_v51, 0.0  ;;  %v873_v3 = vadd.f32 %v1648_v31, %v824_v53  ;;  %v1732_v31 = vld [vmem:[#allocation5 + $0x188] sm:$0xff]   ;;  %v1746_v53 = vld [vmem:[#allocation5 + $0x1f0] sm:$0xff]  }
 0x430   :  { %1574 = vmatpush3.bf16.msra.mxu0 %v1732_v31  ;;  %1654 = vmatpush3.bf16.msra.mxu1 %v1736_v36  ;;  %v1745_v51 = vld [vmem:[#allocation5 + $0x228] sm:$0xff]  }
 0x431   :  { %v881_v39 = vadd.f32 %v880_v56, %v2084_v57  ;;  %v891_v62 = vmul.f32 %v2084_v57, %v2084_v57  ;;  %v2089_v26 = vmax.f32 %v873_v3, 0.0  ;;  %1575 = vmatprep.subr.bf16.mxu0 %v1734_v33  ;;  %1655 = vmatprep.subr.bf16.mxu1 %v1739_v41  ;;  %v1748_v56 = vld [vmem:[#allocation5 + $0x230] sm:$0xff]   ;;  %v1749_v3 = vld [vmem:[#allocation5 + $0x1f8] sm:$0xff]  }
 0x433   :  { %v894_v22 = vadd.f32 %v893_v34, %v891_v62  ;;  %v882_v63 = vadd.f32 %v881_v39, %v2089_v26  ;;  %v892_v0 = vmul.f32 %v2089_v26, %v2089_v26  ;;  %v1750_v34 = vld [vmem:[#allocation5 + $0x1b8] sm:$0xff]  }
 0x434   :  { %1576 = vmatpush3.bf16.msra.mxu0 %v1735_v35  ;;  %1656 = vmatpush3.bf16.msra.mxu1 %v1739_v41  ;;  %v1751_v39 = vld [vmem:[#allocation5 + $0x238] sm:$0xff]  }
 0x435   :  { %v883_v1 = vrot.slane %v882_v63, 4  ;;  %v895_v4 = vadd.f32 %v894_v22, %v892_v0  ;;  %1577 = vmatprep.subr.bf16.mxu0 %v1737_v37  ;;  %1657 = vmatprep.subr.bf16.mxu1 %v1742_v47 }
 0x437   :  { %v884_v5 = vadd.f32 %v883_v1, %v882_v63  ;;  %v896_v6 = vrot.slane %v895_v4, 4 }
 0x438   :  { %1578 = vmatpush3.bf16.msra.mxu0 %v1738_v38  ;;  %1658 = vmatpush3.bf16.msra.mxu1 %v1742_v47 }
 0x439   :  { %v885_v7 = vrot.slane %v884_v5, 2  ;;  %v897_v8 = vadd.f32 %v896_v6, %v895_v4  ;;  %1579 = vmatprep.subr.bf16.mxu0 %v1740_v42  ;;  %1659 = vmatprep.subr.bf16.mxu1 %v1745_v51 }
 0x43b   :  { %v886_v9 = vadd.f32 %v885_v7, %v884_v5  ;;  %v898_v10 = vrot.slane %v897_v8, 2 }
 0x43c   :  { %1580 = vmatpush3.bf16.msra.mxu0 %v1741_v44  ;;  %1660 = vmatpush3.bf16.msra.mxu1 %v1745_v51 }
 0x43d   :  { %v887_v11 = vrot.slane %v886_v9, 1  ;;  %v899_v12 = vadd.f32 %v898_v10, %v897_v8  ;;  %1581 = vmatprep.subr.bf16.mxu0 %v1743_v49  ;;  %1661 = vmatprep.subr.bf16.mxu1 %v1748_v56 }
 0x43f   :  { %v900_v14 = vrot.slane %v899_v12, 1  ;;  %v888_v15 = vadd.f32 %v887_v11, %v886_v9 }
 0x440   :  { %1582 = vmatpush3.bf16.msra.mxu0 %v1744_v50  ;;  %1662 = vmatpush3.bf16.msra.mxu1 %v1748_v56  ;;  %v2123_v50 = vld [vmem:[#allocation7 + $0x8] sm:$0x7] }
 0x441   :  { %v901_v16 = vadd.f32 %v900_v14, %v899_v12  ;;  %1583 = vmatprep.subr.bf16.mxu0 %v1746_v53  ;;  %1663 = vmatprep.subr.bf16.mxu1 %v1751_v39  ;;  %v1046_v51 = vrot.slane %v2123_v50, %v1989_v2 }
 0x443   :  { %v902_v17 = vsel %vm128_vm0, %v888_v15, %v901_v16 }
 0x444   :  { %903 = vrot.lane.b32.xlu0 %v902_v17, %s1857_s9  ;;  %1584 = vmatpush3.bf16.msra.mxu0 %v1747_v54 }
 0x445   :  { %1585 = vmatprep.subr.bf16.mxu0 %v1749_v3  ;;  %1664 = vmatpush3.bf16.msra.mxu1 %v1751_v39 }
 0x448   :  { %1586 = vmatpush3.bf16.msra.mxu0 %v1750_v34 }
 0x4b6   :  { %v904_v19 = vpop.permute.xlu0 %903 }
 0x4b7   :  { %v905_v20 = vadd.f32 %v904_v19, %v902_v17 }
 0x4b9   :  { %906 = vrot.lane.b32.xlu1 %v905_v20, %s1860_s2 }
 0x52b   :  { %v907_v21 = vpop.permute.xlu1 %906 }
 0x52c   :  { %v908_v23 = vadd.f32 %v907_v21, %v905_v20 }
 0x52e   :  { %909 = vrot.lane.b32.xlu0 %v908_v23, %s1861_s23 }
 0x5a0   :  { %v910_v24 = vpop.permute.xlu0 %909 }
 0x5a1   :  { %v911_v25 = vadd.f32 %v910_v24, %v908_v23 }
 0x5a3   :  { %912 = vrot.lane.b32.xlu1 %v911_v25, %s1853_s22 }
 0x615   :  { %v913_v62 = vpop.permute.xlu1 %912 }
 0x616   :  { %v914_v22 = vadd.f32 %v913_v62, %v911_v25 }
 0x618   :  { %v915_v63 = vmul.f32 0.001953125, %v914_v22 }
 0x61a   :  { %v916_v0 = vmul.f32 %v915_v63, %v915_v63 }
 0x61c   :  { %v918_v1 = vrot.slane %v916_v0, 7 }
 0x61e   :  { %v920_v4 = vsub.f32 %v915_v63, %v918_v1 }
 0x620   :  { %v921_v5 = vadd.f32 1e-05, %v920_v4 }
 0x622   :  { %1754 = vrsqrt.f32 %v921_v5 }
 0x62c   :  { %v1755_v6 = vpop.eup %1754 }
 0x62d   :  { %v923_v7 = vmul.f32 %v1755_v6, %v2070_v18 }
 0x62f   :  { %v925_v8 = vrot.slane %v923_v7, 1  ;;  %v935_v10 = vrot.slane %v923_v7, %v2022_v43 }
 0x631   :  { %v927_v9 = vmul.f32 %v925_v8, %v915_v63  ;;  %v939_v14 = vmul.f32 %v935_v10, %v2089_v26  ;;  %v936_v16 = vmul.f32 %v935_v10, %v2076_v45  ;;  %v937_v17 = vmul.f32 %v935_v10, %v2074_v40 }
 0x632   :  { %v938_v19 = vmul.f32 %v935_v10, %v2084_v57 }
 0x633   :  { %v929_v11 = vrot.slane %v927_v9, 6 }
 0x635   :  { %v931_v12 = vsub.f32 %v2070_v18, %v929_v11 }
 0x637   :  { %v943_v15 = vrot.slane %v931_v12, %v2026_v48 }
 0x639   :  { %v947_v20 = vadd.f32 %v943_v15, %v939_v14  ;;  %v944_v21 = vadd.f32 %v943_v15, %v936_v16  ;;  %v945_v23 = vadd.f32 %v943_v15, %v937_v17  ;;  %v946_v24 = vadd.f32 %v943_v15, %v938_v19 }
 0x63b   :  { %v949_v25 = vrot.slane %v947_v20, 7  ;;  %v954_v27 = vrot.slane %v944_v21, 7  ;;  %v955_v28 = vrot.slane %v945_v23, 7  ;;  %v987_v29 = vpack.c.bf16 %v945_v23, %v944_v21 }
 0x63c   :  { %v969_v30 = vrot.slane %v944_v21, 1  ;;  %v970_v18 = vrot.slane %v945_v23, 1  ;;  %v972_v31 = vrot.slane %v946_v24, 1  ;;  %v974_v45 = vrot.slane %v947_v20, 1 }
 0x63d   :  { %v956_v26 = vsel %vm128_vm0, %v954_v27, %v955_v28  ;;  %v964_v32 = vsel %vm128_vm0, %v949_v25, %v954_v27  ;;  %1223 = vmatprep.mubr.bf16.mxu0 %v987_v29  ;;  %v990_v35 = vpack.c.bf16 %v947_v20, %v946_v24  ;;  %v957_v41 = vrot.slane %v946_v24, 7 }
 0x63e   :  { %v1484_v40 = vpack.c.bf16 %v956_v26, %v964_v32  ;;  %v971_v57 = vsel %vm144_vm1, %v969_v30, %v970_v18  ;;  %v973_v33 = vsel %vm144_vm1, %v970_v18, %v972_v31  ;;  %v975_v37 = vsel %vm144_vm1, %v972_v31, %v974_v45 }
 0x63f   :  { %v1490_v36 = vpack.c.bf16 %v973_v33, %v971_v57  ;;  %v981_v38 = vsel %vm144_vm1, %v974_v45, %v969_v30  ;;  %v958_v44 = vsel %vm128_vm0, %v955_v28, %v957_v41  ;;  %v959_v47 = vsel %vm128_vm0, %v957_v41, %v949_v25 }
 0x640   :  { %1485 = vmatmul.mubr.msk.bf16.vlgmr.msra.gmra.mrb[16].mxu0 %vm1949_vm6, %v1484_v40  ;;  %v1493_v42 = vpack.c.bf16 %v981_v38, %v975_v37  ;;  %v1487_v49 = vpack.c.bf16 %v959_v47, %v958_v44 }
 0x641   :  { %1665 = vmatprep.mubr.msk.bf16.mxu1 %vm1959_vm7, %v1490_v36  ;;  %1231 = vmatprep.mubr.bf16.mxu0 %v990_v35 }
 0x642   :  { %1666 = vmatmul.mubr.msk.bf16.vlgmr.msra.gmra.mrb[8].mxu1 %vm1967_vm8, %v1493_v42 }
 0x648   :  { %1488 = vmatmul.mubr.msk.bf16.gmra.mrb[20].mxu0 %vm1974_vm10, %v1487_v49 }
 0x713   :  { %v1587_v46 = vpop.f32.mrb[16].mxu0 }
 0x714   :  { %v1588_v52 = vpop.f32.mrb[17].mxu0 }
 0x715   :  { %v1589_v53 = vadd.f32 %v1588_v52, %v1587_v46  ;;  %v1667_v54 = vpop.f32.mrb[8].mxu1  ;;  %v1590_v56 = vpop.f32.mrb[18].mxu0 }
 0x716   :  { %v1274_v55 = vpop.f32.mrb[9].mxu1  ;;  %v1591_v3 = vpop.f32.mrb[19].mxu0 }
 0x717   :  { %v1226_v34 = vadd.f32 %v1589_v53, %v1046_v51  ;;  %v1592_v39 = vadd.f32 %v1591_v3, %v1590_v56  ;;  %v1668_v62 = vpop.f32.mrb[10].mxu1 }
 0x718   :  { %v1277_v22 = vpop.f32.mrb[11].mxu1 }
 0x719   :  { %v1275_v63 = vadd.f32 %v1274_v55, %v1226_v34  ;;  %v1229_v0 = vadd.f32 %v1592_v39, %v1046_v51 }
 0x71b   :  { %v1278_v61 = vadd.f32 %v1277_v22, %v1229_v0  ;;  %v1593_v1 = vpop.f32.mrb[20].mxu0  ;;  %v1289_v2 = vmax.f32 %v1275_v63, 0.0 }
 0x71c   :  { %v1594_v4 = vpop.f32.mrb[21].mxu0 }
 0x71d   :  { %v1290_v5 = vmax.f32 %v1278_v61, 0.0  ;;  %v1595_v6 = vadd.f32 %v1594_v4, %v1593_v1  ;;  %v1596_v7 = vpop.f32.mrb[22].mxu0  ;;  %v1302_v15 = vmul.f32 %v1289_v2, %v1289_v2 }
 0x71e   :  { %v1597_v8 = vpop.f32.mrb[23].mxu0 }
 0x71f   :  { %v1234_v9 = vadd.f32 %v1595_v6, %v1046_v51  ;;  %v1598_v10 = vadd.f32 %v1597_v8, %v1596_v7  ;;  %v1303_v11 = vmul.f32 %v1290_v5, %v1290_v5  ;;  %v1293_v16 = vadd.f32 %v1290_v5, %v1289_v2 }
 0x721   :  { %v1283_v12 = vadd.f32 %v1667_v54, %v1234_v9  ;;  %v1237_v14 = vadd.f32 %v1598_v10, %v1046_v51  ;;  %v1306_v20 = vadd.f32 %v1303_v11, %v1302_v15 }
 0x723   :  { %v1291_v17 = vmax.f32 %v1283_v12, 0.0  ;;  %v1286_v19 = vadd.f32 %v1668_v62, %v1237_v14 }
 0x725   :  { %v1294_v21 = vadd.f32 %v1293_v16, %v1291_v17  ;;  %v1304_v23 = vmul.f32 %v1291_v17, %v1291_v17  ;;  %v1292_v24 = vmax.f32 %v1286_v19, 0.0 }
 0x727   :  { %v1307_v25 = vadd.f32 %v1306_v20, %v1304_v23  ;;  %v1295_v27 = vadd.f32 %v1294_v21, %v1292_v24  ;;  %v1305_v28 = vmul.f32 %v1292_v24, %v1292_v24 }
 0x729   :  { %v1296_v29 = vrot.slane %v1295_v27, 4  ;;  %v1308_v30 = vadd.f32 %v1307_v25, %v1305_v28 }
 0x72b   :  { %v1297_v18 = vadd.f32 %v1296_v29, %v1295_v27  ;;  %v1309_v31 = vrot.slane %v1308_v30, 4 }
 0x72d   :  { %v1298_v26 = vrot.slane %v1297_v18, 2  ;;  %v1310_v32 = vadd.f32 %v1309_v31, %v1308_v30 }
 0x72f   :  { %v1299_v45 = vadd.f32 %v1298_v26, %v1297_v18  ;;  %v1311_v40 = vrot.slane %v1310_v32, 2 }
 0x731   :  { %v1300_v57 = vrot.slane %v1299_v45, 1  ;;  %v1312_v33 = vadd.f32 %v1311_v40, %v1310_v32 }
 0x733   :  { %v1313_v35 = vrot.slane %v1312_v33, 1  ;;  %v1301_v36 = vadd.f32 %v1300_v57, %v1299_v45 }
 0x735   :  { %v1314_v37 = vadd.f32 %v1313_v35, %v1312_v33 }
 0x737   :  { %v1315_v38 = vsel %vm128_vm0, %v1301_v36, %v1314_v37 }
 0x738   :  { %1316 = vrot.lane.b32.xlu0 %v1315_v38, %s1857_s9 }
 0x7aa   :  { %v1317_v41 = vpop.permute.xlu0 %1316 }
 0x7ab   :  { %v1318_v42 = vadd.f32 %v1317_v41, %v1315_v38 }
 0x7ad   :  { %1319 = vrot.lane.b32.xlu1 %v1318_v42, %s1860_s2 }
 0x81f   :  { %v1320_v44 = vpop.permute.xlu1 %1319 }
 0x820   :  { %v1321_v47 = vadd.f32 %v1320_v44, %v1318_v42 }
 0x822   :  { %1322 = vrot.lane.b32.xlu0 %v1321_v47, %s1861_s23 }
 0x894   :  { %v1323_v49 = vpop.permute.xlu0 %1322 }
 0x895   :  { %v1324_v46 = vadd.f32 %v1323_v49, %v1321_v47 }
 0x897   :  { %1325 = vrot.lane.b32.xlu1 %v1324_v46, %s1853_s22  ;;  %s1862_s22 = smov [#allocation8]  }
 0x898   :  { %s1374_s25 = sshll.u32 %s1862_s22, 4  ;;  %s1375_s25 = int_to_ptr.vmem [resolvable:$true] %s1374_s25 }
 0x899   :  { %s1824_s26 = scalar_lea.vmem %s1375_s25, 512  ;;  %p1829_p11 = scmp.lt.s32.totalorder %s1375_s25, %s1375_s25 }
 0x89a   :  { %p1825_p10 = scmp.ne.s32.totalorder %s1375_s25, %s1824_s26  ;;  %p1830_p12 = scmp.lt.s32.totalorder %s1824_s26, %s1824_s26 }
 0x89c   :  { %p1831_p13 = por %p1830_p12, %p1829_p11 }
 0x89e   :  { %p1832_p0 = pnand %p1831_p13, %p1825_p10 }
 0x909   :  { %v1326_v51 = vpop.permute.xlu1 %1325 }
 0x90a   :  { %v1327_v52 = vadd.f32 %v1326_v51, %v1324_v46 }
 0x90c   :  { %v1328_v53 = vmul.f32 0.001953125, %v1327_v52 }
 0x90e   :  { %v1329_v54 = vmul.f32 %v1328_v53, %v1328_v53 }
 0x910   :  { %v1331_v56 = vrot.slane %v1329_v54, 7 }
 0x912   :  { %v1333_v55 = vsub.f32 %v1328_v53, %v1331_v56 }
 0x914   :  { %v1334_v3 = vadd.f32 1e-05, %v1333_v55 }
 0x916   :  { %1756 = vrsqrt.f32 %v1334_v3 }
 0x920   :  { %v1757_v34 = vpop.eup %1756 }
 0x921   :  { %v1336_v39 = vmul.f32 %v1757_v34, %v2123_v50 }
 0x923   :  { %v1338_v62 = vrot.slane %v1336_v39, 1  ;;  %v1348_v63 = vrot.slane %v1336_v39, %v2022_v43 }
 0x925   :  { %v1340_v22 = vmul.f32 %v1338_v62, %v1328_v53  ;;  %v1349_v1 = vmul.f32 %v1348_v63, %v1289_v2  ;;  %v1350_v6 = vmul.f32 %v1348_v63, %v1290_v5  ;;  %v1351_v7 = vmul.f32 %v1348_v63, %v1291_v17 }
 0x926   :  { %v1352_v8 = vmul.f32 %v1348_v63, %v1292_v24 }
 0x927   :  { %v1342_v0 = vrot.slane %v1340_v22, 6 }
 0x929   :  { %v1344_v61 = vsub.f32 %v2123_v50, %v1342_v0 }
 0x92b   :  { %v1356_v4 = vrot.slane %v1344_v61, %v2026_v48 }
 0x92d   :  { %v1357_v9 = vadd.f32 %v1356_v4, %v1349_v1  ;;  %v1358_v10 = vadd.f32 %v1356_v4, %v1350_v6  ;;  %v1359_v11 = vadd.f32 %v1356_v4, %v1351_v7  ;;  %v1360_v12 = vadd.f32 %v1356_v4, %v1352_v8 }
 0x92f   :  { %v1361_v14 = vadd.f32 %v1357_v9, %v2038_v60  ;;  %v1362_v15 = vadd.f32 %v1358_v10, %v2040_v13  ;;  %v1363_v43 = vadd.f32 %v1359_v11, %v2034_v58  ;;  %v1364_v50 = vadd.f32 %v1360_v12, %v2036_v59 }
 0x931   :  { %1365 = vst [vmem:[#allocation8] sm:$0xff] %v1361_v14  ;;  %1366 = vst [vmem:[#allocation8 + $0x8] sm:$0xff] %v1362_v15 }
 0x932   :  { %1367 = vst [vmem:[#allocation8 + $0x10] sm:$0xff] %v1363_v43  ;;  %1368 = vst [vmem:[#allocation8 + $0x18] sm:$0xff] %v1364_v50 }
 0x933   :  { %1835 = shalt.err (!%p1832_p0)
}
 0x934   :  { %s1836_s29 = scalar_lea.hbm %s2158_s3, 512 }
 0x935   :  { %p1837_p1 = scmp.ne.s32.totalorder %s2158_s3, %s1836_s29  ;;  %p1840_p2 = scmp.lt.u32.totalorder %s1836_s29, %s2158_s3 }
 0x937   :  { %p1842_p3 = pnand %p1840_p2, %p1837_p1 }
 0x939   :  { %1845 = shalt.err (!%p1842_p3)
}
 0x93a   :  { %1380 = dma.vmem_to_hbm [thread:$0]  %s1375_s25, 512, %s2158_s3, [#allocation4], %s1856_s1, %s1856_s1, %s1857_s9  }
 0x93b   :  { %1850 = dma.done.wait [#allocation4], 512  }
 0x93c   :  { %1851 = vsyncadd [#allocation4], 4294966784 }
 0x93d   :  { %1384 = vsyncpa [#allocation3], 1 }
 0x93e   :  { %1385 = vsyncpa [#allocation6], 1 }
 0x93f   :  { %1386 = vsyncpa [#allocation4], 1 }

</bundles_post_ra>
